<compile_context>
chip_gen: v7x
topology: tpu7x:2x2x1
jax: 0.10.0
libtpu: 0.0.40
codegen_flags: <defaults>
</compile_context>

<pallas_src>
import functools

import jax
import jax.numpy as jnp
from jax.experimental import pallas as pl
from jax.experimental.pallas import tpu as pltpu


# ------------------------------ helpers -----------------------------------

def _pick_tile(dim, candidates):
    """Largest candidate that divides `dim`; fall back to the full dim
    (a block equal to the full array dim always satisfies the (8,128) rule)."""
    for c in candidates:
        if dim % c == 0:
            return c
    return dim


def _swap01(x):
    """(a, b, c) -> (b, a, c). Prefer the layout-aware TPU einshape."""
    if hasattr(pltpu, "einshape"):
        return pltpu.einshape("abc->bac", x)
    return jnp.swapaxes(x, 0, 1)


# ------------------------------ matmul kernels -----------------------------

def _matmul_kernel(x_ref, w_ref, o_ref, acc_ref):
    @pl.when(pl.program_id(2) == 0)
    def _():
        acc_ref[...] = jnp.zeros_like(acc_ref)

    acc_ref[...] += jnp.dot(x_ref[...], w_ref[...],
                            preferred_element_type=jnp.float32)

    @pl.when(pl.program_id(2) == pl.num_programs(2) - 1)
    def _():
        o_ref[...] = acc_ref[...].astype(o_ref.dtype)


def _matmul_bias_kernel(x_ref, w_ref, b_ref, o_ref, acc_ref):
    @pl.when(pl.program_id(2) == 0)
    def _():
        acc_ref[...] = jnp.zeros_like(acc_ref)

    acc_ref[...] += jnp.dot(x_ref[...], w_ref[...],
                            preferred_element_type=jnp.float32)

    @pl.when(pl.program_id(2) == pl.num_programs(2) - 1)
    def _():
        # Bias is added once, at finalize (not per reduction step).
        o_ref[...] = (acc_ref[...] + b_ref[...]).astype(o_ref.dtype)


def pallas_matmul(x, w, b=None, *, out_dtype=jnp.float32,
                  compute_dtype=jnp.bfloat16):
    """(M, K) @ (K, N) [+ b], tiled/pipelined, bf16 MXU ops, f32 accumulation."""
    M, K = x.shape
    K2, N = w.shape
    assert K == K2

    # Tile choices: 256-multiples on MXU-facing dims when they divide (v6e/v7x
    # 2x256^2 MXUs), 128 fallback for v5e-friendly sizes, else the full dim
    # (small/test shapes). Tiles stay well under the v7x 64 MiB VMEM even with
    # double-buffering.
    tm = _pick_tile(M, (256, 128, 64, 32, 16, 8))
    tn = _pick_tile(N, (256, 128))
    tk = _pick_tile(K, (512, 256, 128))
    grid = (M // tm, N // tn, K // tk)

    xc = x.astype(compute_dtype)
    wc = w.astype(compute_dtype)

    in_specs = [
        pl.BlockSpec((tm, tk), lambda i, j, k: (i, k)),
        pl.BlockSpec((tk, tn), lambda i, j, k: (k, j)),
    ]
    if b is None:
        kernel = _matmul_kernel
        args = (xc, wc)
    else:
        kernel = _matmul_bias_kernel
        in_specs.append(pl.BlockSpec((1, tn), lambda i, j, k: (0, j)))
        args = (xc, wc, b.reshape(1, N).astype(jnp.float32))

    return pl.pallas_call(
        kernel,
        out_shape=jax.ShapeDtypeStruct((M, N), out_dtype),
        grid=grid,
        in_specs=in_specs,
        out_specs=pl.BlockSpec((tm, tn), lambda i, j, k: (i, j)),
        scratch_shapes=[pltpu.VMEM((tm, tn), jnp.float32)],
        compiler_params=pltpu.CompilerParams(
            dimension_semantics=("parallel", "parallel", "arbitrary")),
    )(*args)


# --------------------------- attention kernel -------------------------------

def _flash_attention_kernel(q_ref, k_ref, v_ref, o_ref,
                            qt_ref, m_ref, l_ref, acc_ref, *, scale):
    # q_ref: (tq, H, D); k_ref/v_ref: (tkv, H, D); o_ref: (tq, H, D)
    ki = pl.program_id(2)

    @pl.when(ki == 0)
    def _():
        # Head-major, pre-scaled q is resident across the whole KV sweep.
        qt_ref[...] = _swap01(q_ref[...]) * scale        # (H, tq, D)
        m_ref[...] = jnp.full_like(m_ref, -jnp.inf)
        l_ref[...] = jnp.zeros_like(l_ref)
        acc_ref[...] = jnp.zeros_like(acc_ref)

    k = _swap01(k_ref[...])                              # (H, tkv, D)
    v = _swap01(v_ref[...])                              # (H, tkv, D)

    # Scores: contract on the last dim (no MXU-facing transpose), f32 accum.
    s = jnp.einsum("hqd,hkd->hqk", qt_ref[...], k,
                   preferred_element_type=jnp.float32)   # (H, tq, tkv)

    # Online softmax, all stats in f32.
    m_prev = m_ref[...]
    m_new = jnp.maximum(m_prev, jnp.max(s, axis=-1, keepdims=True))
    alpha = jnp.exp(m_prev - m_new)
    p = jnp.exp(s - m_new)                               # (H, tq, tkv) f32
    l_ref[...] = alpha * l_ref[...] + jnp.sum(p, axis=-1, keepdims=True)
    acc_ref[...] = alpha * acc_ref[...] + jnp.einsum(
        "hqk,hkd->hqd", p.astype(v.dtype), v,
        preferred_element_type=jnp.float32)              # (H, tq, D)
    m_ref[...] = m_new

    @pl.when(ki == pl.num_programs(2) - 1)
    def _():
        out = acc_ref[...] * pl.reciprocal(l_ref[...], approx=True)
        o_ref[...] = _swap01(out).astype(o_ref.dtype)    # (tq, H, D)


def pallas_mhsa(qkv, scale, *, out_dtype=jnp.bfloat16):
    """qkv: (B, N, 3, H, D). Returns attention output in (B, N, H, D) layout."""
    B, N, three, H, D = qkv.shape
    assert three == 3
    cdt = qkv.dtype

    tq = _pick_tile(N, (256, 128))
    tkv = _pick_tile(N, (256, 128))
    grid = (B, N // tq, N // tkv)

    q_spec = pl.BlockSpec((None, tq, None, H, D),
                          lambda b, qi, ki: (b, qi, 0, 0, 0))
    k_spec = pl.BlockSpec((None, tkv, None, H, D),
                          lambda b, qi, ki: (b, ki, 1, 0, 0))
    v_spec = pl.BlockSpec((None, tkv, None, H, D),
                          lambda b, qi, ki: (b, ki, 2, 0, 0))
    o_spec = pl.BlockSpec((None, tq, H, D),
                          lambda b, qi, ki: (b, qi, 0, 0))

    return pl.pallas_call(
        functools.partial(_flash_attention_kernel, scale=scale),
        out_shape=jax.ShapeDtypeStruct((B, N, H, D), out_dtype),
        grid=grid,
        in_specs=[q_spec, k_spec, v_spec],
        out_specs=o_spec,
        scratch_shapes=[
            pltpu.VMEM((H, tq, D), cdt),          # pre-scaled, head-major q
            pltpu.VMEM((H, tq, 1), jnp.float32),  # running max m
            pltpu.VMEM((H, tq, 1), jnp.float32),  # running sum l
            pltpu.VMEM((H, tq, D), jnp.float32),  # output accumulator
        ],
        compiler_params=pltpu.CompilerParams(
            dimension_semantics=("parallel", "parallel", "arbitrary")),
    )(qkv, qkv, qkv)


# ------------------------------ forward pass --------------------------------

def attention_forward(x, params, num_heads, *, compute_dtype=jnp.bfloat16):
    """Pallas equivalent of Attention.forward (qkv_bias=False, dropout=0)."""
    B, N, C = x.shape
    H = num_heads
    assert C % H == 0
    D = C // H
    scale = D ** (-0.5)

    x2d = x.reshape(B * N, C)
    # qkv projection -> (B*N, 3C) in compute dtype (halves HBM traffic).
    qkv = pallas_matmul(x2d, params["w_qkv"],
                        out_dtype=compute_dtype, compute_dtype=compute_dtype)
    # Free reshape; the head split / q-k-v split happens via BlockSpec
    # index_maps inside the attention kernel (no HBM transpose).
    qkv = qkv.reshape(B, N, 3, H, D)

    o = pallas_mhsa(qkv, scale, out_dtype=compute_dtype)   # (B, N, H, D)
    o2d = o.reshape(B * N, C)                               # free reshape

    out = pallas_matmul(o2d, params["w_proj"], params["b_proj"],
                        out_dtype=jnp.float32, compute_dtype=compute_dtype)
    return out.reshape(B, N, C)


# --------------------------- reference (plain JAX) ---------------------------

def attention_reference(x, params, num_heads, compute_dtype=jnp.float32):
    """Reference mirroring the kernel's dtype strategy (f32 -> exact spec)."""
    B, N, C = x.shape
    H = num_heads
    D = C // H
    scale = D ** (-0.5)
    cdt = compute_dtype

    w_qkv = params["w_qkv"].astype(cdt)
    w_proj = params["w_proj"].astype(cdt)

    qkv = jnp.dot(x.reshape(B * N, C).astype(cdt), w_qkv,
                  preferred_element_type=jnp.float32).astype(cdt)
    qkv = qkv.reshape(B, N, 3, H, D).transpose(2, 0, 3, 1, 4)   # (3,B,H,N,D)
    q, k, v = qkv[0], qkv[1], qkv[2]
    q = q * scale
    s = jnp.einsum("bhqd,bhkd->bhqk", q, k, preferred_element_type=jnp.float32)
    m = jnp.max(s, axis=-1, keepdims=True)
    p = jnp.exp(s - m)
    l = jnp.sum(p, axis=-1, keepdims=True)
    o = jnp.einsum("bhqk,bhkd->bhqd", p.astype(cdt), v,
                   preferred_element_type=jnp.float32) / l
    o = o.astype(cdt).transpose(0, 2, 1, 3).reshape(B * N, C)
    out = (jnp.dot(o, w_proj, preferred_element_type=jnp.float32)
           + params["b_proj"].astype(jnp.float32))
    return out.reshape(B, N, C)


# ----------------------------------- main -----------------------------------

if __name__ == "__main__":
    B, N, C = 2, 8, 32
    num_heads = 8

    key = jax.random.PRNGKey(0)
    k_x, k_qkv, k_proj, k_b = jax.random.split(key, 4)

    x = jax.random.normal(k_x, (B, N, C), dtype=jnp.float32)

    # Synthetic parameters; shapes match nn.Linear(dim, dim*3) / nn.Linear(dim,
    # dim) with weights stored transposed so the kernels compute x @ W.
    params = {
        "w_qkv": 0.05 * jax.random.normal(k_qkv, (C, 3 * C), dtype=jnp.float32),
        "w_proj": 0.05 * jax.random.normal(k_proj, (C, C), dtype=jnp.float32),
        "b_proj": 0.05 * jax.random.normal(k_b, (C,), dtype=jnp.float32),
    }

    out = attention_forward(x, params, num_heads)
    out = jax.block_until_ready(out)
    assert out.shape == (B, N, C)

    # Tight check against a precision-matched (bf16 matmul / f32 accum) ref.
    ref_matched = attention_reference(x, params, num_heads,
                                      compute_dtype=jnp.bfloat16)
    assert jnp.allclose(out, ref_matched, atol=2e-3, rtol=2e-3), float(
        jnp.max(jnp.abs(out - ref_matched)))

    # Loose sanity check against the full-f32 reference (bf16 rounding noise).
    ref_f32 = attention_reference(x, params, num_heads,
                                  compute_dtype=jnp.float32)
    assert jnp.allclose(out, ref_f32, atol=3e-2, rtol=3e-2), float(
        jnp.max(jnp.abs(out - ref_f32)))

    print("KERNEL_OK")
</pallas_src>

<mosaic_0001>
module attributes {stable_mosaic.version = 11 : i64} {
  func.func @_matmul_kernel(%arg0: i32, %arg1: i32, %arg2: i32, %arg3: memref<16x32xbf16, #tpu.memory_space<vmem>>, %arg4: memref<32x96xbf16, #tpu.memory_space<vmem>>, %arg5: memref<16x96xbf16, #tpu.memory_space<vmem>>, %arg6: memref<16x96xf32, #tpu.memory_space<vmem>>) attributes {dimension_semantics = [#tpu.dimension_semantics<parallel>, #tpu.dimension_semantics<parallel>, #tpu.dimension_semantics<arbitrary>], iteration_bounds = array<i64: 1, 1, 1>, scalar_prefetch = 0 : i64, scratch_operands = 1 : i64, tpu.core_type = #tpu.core_type<tc>, window_params = [{transform_indices = @transform_0, window_bounds = array<i64: 16, 32>}, {transform_indices = @transform_1, window_bounds = array<i64: 32, 96>}, {transform_indices = @transform_2, window_bounds = array<i64: 16, 96>}]} {
    %c0_i32 = arith.constant 0 : i32
    %0 = arith.cmpi eq, %arg2, %c0_i32 : i32
    %1 = arith.extui %0 : i1 to i32
    %c0_i32_0 = arith.constant 0 : i32
    %2 = arith.cmpi ne, %1, %c0_i32_0 : i32
    scf.if %2 {
      %cst_10 = arith.constant 0.000000e+00 : f32
      %12 = vector.broadcast %cst_10 : f32 to vector<16x96xf32>
      %c0_11 = arith.constant 0 : index
      %c0_12 = arith.constant 0 : index
      %13 = vector.load %arg6[%c0_11, %c0_12] : memref<16x96xf32, #tpu.memory_space<vmem>>, vector<16x96xf32>
      tpu.vector_store %arg6[%c0_11, %c0_12], %12 {strides = array<i32>} : memref<16x96xf32, #tpu.memory_space<vmem>>, vector<16x96xf32>,
    } else {
    }
    %c0 = arith.constant 0 : index
    %c0_1 = arith.constant 0 : index
    %3 = vector.load %arg6[%c0, %c0_1] : memref<16x96xf32, #tpu.memory_space<vmem>>, vector<16x96xf32>
    %c0_2 = arith.constant 0 : index
    %c0_3 = arith.constant 0 : index
    %4 = vector.load %arg3[%c0_2, %c0_3] : memref<16x32xbf16, #tpu.memory_space<vmem>>, vector<16x32xbf16>
    %c0_4 = arith.constant 0 : index
    %c0_5 = arith.constant 0 : index
    %5 = vector.load %arg4[%c0_4, %c0_5] : memref<32x96xbf16, #tpu.memory_space<vmem>>, vector<32x96xbf16>
    %cst = arith.constant dense<0.000000e+00> : vector<16x96xf32>
    %6 = tpu.matmul %4, %5, %cst {dimension_numbers = #tpu.dot_dimension_numbers<[1], [0], [0], [1], [0, 0, 1, 1], [], []>} : vector<16x32xbf16>, vector<32x96xbf16>, vector<16x96xf32> -> vector<16x96xf32>
    %7 = arith.addf %3, %6 : vector<16x96xf32>
    %c0_6 = arith.constant 0 : index
    %c0_7 = arith.constant 0 : index
    %8 = vector.load %arg6[%c0_6, %c0_7] : memref<16x96xf32, #tpu.memory_space<vmem>>, vector<16x96xf32>
    tpu.vector_store %arg6[%c0_6, %c0_7], %7 {strides = array<i32>} : memref<16x96xf32, #tpu.memory_space<vmem>>, vector<16x96xf32>,
    %c0_i32_8 = arith.constant 0 : i32
    %9 = arith.cmpi eq, %arg2, %c0_i32_8 : i32
    %10 = arith.extui %9 : i1 to i32
    %c0_i32_9 = arith.constant 0 : i32
    %11 = arith.cmpi ne, %10, %c0_i32_9 : i32
    scf.if %11 {
      %c0_10 = arith.constant 0 : index
      %c0_11 = arith.constant 0 : index
      %12 = vector.load %arg6[%c0_10, %c0_11] : memref<16x96xf32, #tpu.memory_space<vmem>>, vector<16x96xf32>
      %13 = arith.truncf %12 : vector<16x96xf32> to vector<16x96xbf16>
      %c0_12 = arith.constant 0 : index
      %c0_13 = arith.constant 0 : index
      %14 = vector.load %arg5[%c0_12, %c0_13] : memref<16x96xbf16, #tpu.memory_space<vmem>>, vector<16x96xbf16>
      tpu.vector_store %arg5[%c0_12, %c0_13], %13 {strides = array<i32>} : memref<16x96xbf16, #tpu.memory_space<vmem>>, vector<16x96xbf16>,
    } else {
    }
    return
  }
  func.func @transform_0(%arg0: i32, %arg1: i32, %arg2: i32) -> (i32, i32) {
    %c0_i32 = arith.constant 0 : i32
    return %arg0, %arg2 : i32, i32
  }
  func.func @transform_1(%arg0: i32, %arg1: i32, %arg2: i32) -> (i32, i32) {
    %c0_i32 = arith.constant 0 : i32
    return %arg2, %arg1 : i32, i32
  }
  func.func @transform_2(%arg0: i32, %arg1: i32, %arg2: i32) -> (i32, i32) {
    %c0_i32 = arith.constant 0 : i32
    return %arg0, %arg1 : i32, i32
  }
}

</mosaic_0001>

<bundles_post_ra>
// kernel: tpu_custom_call.1
= control target key start
LH: loop header
LB: loop body
LE: loop exit
PB: predicated region body
PF: predicated region fallthrough
CT: control target
= control target key end

     0   :  { %7 = vsyncpa [#allocation4], 0  ;;  %s329_s0 = inlined_call_operand.hbm [shape: bf16[16,32], index: 0, kind: input, shape index: {}]   ;;  %s330_s1 = inlined_call_operand.hbm [shape: bf16[32,96], index: 1, kind: input, shape index: {}]   ;;  %s331_s2 = inlined_call_operand.hbm [shape: bf16[16,96], index: 2, kind: output, shape index: {}]  }
   0x1   :  { %8 = vsyncpa [#allocation7], 0 }
   0x2   :  { %9 = vsyncpa [#allocation5], 0  ;;  %s258_s9 = smov [#allocation3]   ;;  %s186_s13 = scalar_lea.hbm %s329_s0, 128 }
   0x3   :  { %s15_s10 = sshll.u32 %s258_s9, 4  ;;  %p187_p0 = scmp.ne.s32.totalorder %s329_s0, %s186_s13  ;;  %s16_s10 = int_to_ptr.vmem [resolvable:$true] %s15_s10 }
   0x4   :  { %p190_p1 = scmp.lt.u32.totalorder %s186_s13, %s329_s0 }
   0x6   :  { %p192_p2 = pnand %p190_p1, %p187_p0 }
   0x8   :  { %195 = shalt.err (!%p192_p2)
}
   0x9   :  { %s196_s18 = scalar_lea.vmem %s16_s10, 128  ;;  %p201_p4 = scmp.lt.s32.totalorder %s16_s10, %s16_s10 }
   0xa   :  { %p197_p3 = scmp.ne.s32.totalorder %s16_s10, %s196_s18  ;;  %p202_p5 = scmp.lt.s32.totalorder %s196_s18, %s196_s18 }
   0xc   :  { %p203_p6 = por %p202_p5, %p201_p4 }
   0xe   :  { %p204_p7 = pnand %p203_p6, %p197_p3 }
  0x10   :  { %207 = shalt.err (!%p204_p7)
}
  0x11   :  { %s259_s19 = smov 64   ;;  %s260_s20 = smov 4  }
  0x12   :  { %21 = dma.hbm_to_vmem [thread:$0]  %s329_s0, 128, %s16_s10, [#allocation4], %s259_s19, %s259_s19, %s260_s20  }
  0x13   :  { %s261_s23 = smov [#allocation6]   ;;  %s208_s27 = scalar_lea.hbm %s330_s1, 256 }
  0x14   :  { %s27_s24 = sshll.u32 %s261_s23, 4  ;;  %p209_p8 = scmp.ne.s32.totalorder %s330_s1, %s208_s27  ;;  %s28_s24 = int_to_ptr.vmem [resolvable:$true] %s27_s24 }
  0x15   :  { %p212_p9 = scmp.lt.u32.totalorder %s208_s27, %s330_s1 }
  0x17   :  { %p214_p10 = pnand %p212_p9, %p209_p8 }
  0x19   :  { %217 = shalt.err (!%p214_p10)
}
  0x1a   :  { %s218_s4 = scalar_lea.vmem %s28_s24, 256  ;;  %p223_p12 = scmp.lt.s32.totalorder %s28_s24, %s28_s24 }
  0x1b   :  { %p219_p11 = scmp.ne.s32.totalorder %s28_s24, %s218_s4  ;;  %p224_p13 = scmp.lt.s32.totalorder %s218_s4, %s218_s4 }
  0x1d   :  { %p225_p0 = por %p224_p13, %p223_p12 }
  0x1f   :  { %p226_p1 = pnand %p225_p0, %p219_p11 }
  0x21   :  { %229 = shalt.err (!%p226_p1)
}
  0x22   :  { %33 = dma.hbm_to_vmem [thread:$0]  %s330_s1, 256, %s28_s24, [#allocation7], %s259_s19, %s259_s19, %s260_s20  }
  0x23   :  { %252 = dma.done.wait [#allocation4], 128  }
  0x24   :  { %253 = vsyncadd [#allocation4], 4294967168 }
  0x25   :  { %254 = dma.done.wait [#allocation7], 256  }
  0x26   :  { %255 = vsyncadd [#allocation7], 4294967040  ;;  %vm45_vm0 = vcmask 785408   ;;  %v262_v0 = vmov 0.0   ;;  %vm263_vm1 = vmmov 0   ;;  %v183_v1 = vld [vmem:[#allocation6] sm:$0xff]  }
  0x27   :  { %46 = vst.msk [vmem:[#allocation2] sm:$0xff] %vm45_vm0, %v262_v0  ;;  %47 = vst.msk [vmem:[#allocation2 + $0x8] sm:$0xff] %vm45_vm0, %v262_v0  ;;  %168 = vmatprep.subr.bf16.mxu0 %v262_v0  ;;  %172 = vmatprep.mubr.msk.bf16.mxu0 %vm263_vm1, %v262_v0  ;;  %v184_v2 = vld [vmem:[#allocation6 + $0x8] sm:$0xff]   ;;  %v185_v3 = vld [vmem:[#allocation3] sm:$0xff]   ;;  %vm73_vm2 = vcmask 261120   ;;  %vm136_vm3 = vcmask 781312  }
  0x28   :  { %169 = vmatpush3.bf16.msra.mxu0 %v183_v1  ;;  %s264_s1 = smov [#allocation8]  }
  0x29   :  { %170 = vmatprep.subr.bf16.mxu0 %v262_v0  ;;  %s144_s6 = sshll.u32 %s264_s1, 4  ;;  %s145_s6 = int_to_ptr.vmem [resolvable:$true] %s144_s6 }
  0x2a   :  { %s230_s7 = scalar_lea.vmem %s145_s6, 128  ;;  %p235_p3 = scmp.lt.s32.totalorder %s145_s6, %s145_s6 }
  0x2b   :  { %p231_p2 = scmp.ne.s32.totalorder %s145_s6, %s230_s7  ;;  %p236_p4 = scmp.lt.s32.totalorder %s230_s7, %s230_s7 }
  0x2c   :  { %171 = vmatpush3.bf16.msra.mxu0 %v184_v2 }
  0x2d   :  { %p237_p5 = por %p236_p4, %p235_p3 }
  0x2e   :  { %v48_v4 = vld [vmem:[#allocation2] sm:$0xff]  ;;  %v49_v6 = vld [vmem:[#allocation2 + $0x8] sm:$0xff] }
  0x2f   :  { %173 = vmatmul.mubr.msk.bf16.vlgmr.msra.gmra.mrb[0].mxu0 %vm73_vm2, %v185_v3  ;;  %p238_p6 = pnand %p237_p5, %p231_p2 }
 0x102   :  { %v111_v5 = vpop.f32.mrb[0].mxu0 }
 0x103   :  { %v118_v7 = vadd.f32 %v111_v5, %v48_v4  ;;  %v174_v8 = vpop.f32.mrb[1].mxu0 }
 0x104   :  { %v114_v9 = vpop.f32.mrb[2].mxu0 }
 0x105   :  { %121 = vst.msk [vmem:[#allocation2] sm:$0xff] %vm45_vm0, %v118_v7  ;;  %v119_v10 = vadd.f32 %v114_v9, %v49_v6  ;;  %v175_v11 = vpop.f32.mrb[3].mxu0 }
 0x107   :  { %122 = vst.msk [vmem:[#allocation2 + $0x8] sm:$0xff] %vm45_vm0, %v119_v10 }
 0x10c   :  { %v126_v12 = vld [vmem:[#allocation2] sm:$0xff] }
 0x10d   :  { %v163_v13 = vpack.c.bf16 %v126_v12, %v126_v12 }
 0x10e   :  { %v127_v14 = vld [vmem:[#allocation2 + $0x8] sm:$0xff] }
 0x10f   :  { %v164_v15 = vpack.c.bf16 %v127_v14, %v127_v14  ;;  %137 = vst.msk [vmem:[#allocation8] sm:$0xf] %vm136_vm3, %v163_v13 }
 0x111   :  { %138 = vst.msk [vmem:[#allocation8 + $0x4] sm:$0xf] %vm136_vm3, %v164_v15 }
 0x112   :  { %241 = shalt.err (!%p238_p6)
}
 0x113   :  { %s242_s10 = scalar_lea.hbm %s331_s2, 128 }
 0x114   :  { %p243_p7 = scmp.ne.s32.totalorder %s331_s2, %s242_s10  ;;  %p246_p8 = scmp.lt.u32.totalorder %s242_s10, %s331_s2 }
 0x116   :  { %p248_p9 = pnand %p246_p8, %p243_p7 }
 0x118   :  { %251 = shalt.err (!%p248_p9)
}
 0x119   :  { %150 = dma.vmem_to_hbm [thread:$0]  %s145_s6, 128, %s331_s2, [#allocation5], %s259_s19, %s259_s19, %s260_s20  }
 0x11a   :  { %256 = dma.done.wait [#allocation5], 128  }
 0x11b   :  { %257 = vsyncadd [#allocation5], 4294967168 }
 0x11c   :  { %154 = vsyncpa [#allocation4], 1 }
 0x11d   :  { %155 = vsyncpa [#allocation7], 1 }
 0x11e   :  { %156 = vsyncpa [#allocation5], 1 }

</bundles_post_ra>
